<compile_context>
chip_gen: v6e
topology: v6e:2x2x1
jax: 0.10.0
libtpu: 0.0.40
codegen_flags: <defaults>
</compile_context>

<pallas_src>
import math

import jax
import jax.numpy as jnp
from jax.experimental import pallas as pl
from jax.experimental.pallas import tpu as pltpu

NEGATIVE_SLOPE = 0.2
SCALE = math.sqrt(2.0)
NEG_SCALE = NEGATIVE_SLOPE * SCALE  # 0.2 * sqrt(2)

_TARGET_BLOCK_BYTES = 8 * 1024 * 1024   # ~8 MiB per block (per buffer)
_VMEM_LIMIT_BYTES = 48 * 1024 * 1024    # 4 x 8 MiB double buffers + headroom;
                                        # < 64 MiB so v7x can honor it.
_MIN_BLOCKS = 4                         # pipeline overlap + v7x 2-TC sharding


def _scaled_leaky_relu_kernel(x_ref, o_ref):
    x = x_ref[...]
    dt = x.dtype
    # One select + one multiply (VPU work is free slack while HBM-bound, but
    # this keeps VALU pressure minimal if ever fused into a larger epilogue).
    o_ref[...] = x * jnp.where(x >= 0, jnp.asarray(SCALE, dt), jnp.asarray(NEG_SCALE, dt))


def _scaled_leaky_relu_jnp(x: jax.Array) -> jax.Array:
    # Single fused elementwise op: one HBM read + one write, no extra passes.
    return x * jnp.where(x >= 0, jnp.asarray(SCALE, x.dtype), jnp.asarray(NEG_SCALE, x.dtype))


def scaled_leaky_relu(
    x: jax.Array,
    *,
    max_lane: int = 1024,
    donate_input: bool = False,
) -> jax.Array:
    """Elementwise ScaledLeakyReLU for an NCHW (or any-shape) input.

    donate_input: set True ONLY if the caller donates x (it will not be read
    again).  This requests input->output buffer aliasing, halving the HBM
    footprint.  If x is still live, XLA would insert a defensive full copy,
    so the default is off.
    """
    orig_shape = x.shape
    dtype = x.dtype
    n = x.size
    itemsize = jnp.dtype(dtype).itemsize

    # Rare fallback: sizes not divisible by 128 lanes (or empty).  A pure-jnp
    # fused elementwise op has exactly the same HBM traffic as the kernel
    # would (1 read + 1 write) with zero pad/concat/slice extra passes.
    if n == 0 or n % 128 != 0:
        return _scaled_leaky_relu_jnp(x)

    # Widest lane width (multiple of 128, <= max_lane) that divides n.
    lane = 128
    for cand in range(max_lane, 127, -128):
        if n % cand == 0:
            lane = cand
            break

    rows = n // lane
    x2d = x.reshape(rows, lane)

    # Good sublane multiple for this dtype (f32: 8, bf16: 16, int8/fp8: 32).
    mult = max(8, 32 // max(1, itemsize))

    if rows < 8:
        # Tiny input: block must equal the full dims (the (8,128) rule's
        # "equals full dim" clause).  grid=(1,) is unavoidable here.
        br = rows
    else:
        m = mult if rows >= mult else 8
        # Byte-sized cap: ~8 MiB per block regardless of dtype.
        br_cap = max(m, (_TARGET_BLOCK_BYTES // (lane * itemsize)) // m * m)
        # At least _MIN_BLOCKS grid steps where possible (pipeline overlap,
        # and lets v7x's two TensorCores each take a share of the stream).
        br_split = max(m, (pl.cdiv(rows, _MIN_BLOCKS) // m) * m)
        br = min(br_cap, br_split)

    grid = (pl.cdiv(rows, br),)

    out2d = pl.pallas_call(
        _scaled_leaky_relu_kernel,
        out_shape=jax.ShapeDtypeStruct((rows, lane), dtype),
        grid_spec=pltpu.PrefetchScalarGridSpec(
            num_scalar_prefetch=0,
            grid=grid,
            in_specs=[pl.BlockSpec((br, lane), lambda i: (i, 0))],
            out_specs=pl.BlockSpec((br, lane), lambda i: (i, 0)),
        ),
        compiler_params=pltpu.CompilerParams(
            dimension_semantics=("parallel",),
            vmem_limit_bytes=_VMEM_LIMIT_BYTES,
        ),
        cost_estimate=pl.CostEstimate(
            flops=2 * n,
            transcendentals=0,
            bytes_accessed=2 * n * itemsize,
        ),
        # Hard aliasing/donation request: only when the caller donates x.
        input_output_aliases=({0: 0} if donate_input else {}),
    )(x2d)

    return out2d.reshape(orig_shape)


def _reference(x):
    return jnp.where(x >= 0, x, NEGATIVE_SLOPE * x) * SCALE


if __name__ == "__main__":
    key = jax.random.PRNGKey(0)

    # NCHW, matching PyTorch conv-style activations (module spec shape).
    x = jax.random.normal(key, (2, 4, 16, 16), dtype=jnp.float32)
    out = jax.block_until_ready(scaled_leaky_relu(x))
    assert out.shape == x.shape and out.dtype == x.dtype
    assert jnp.allclose(out, _reference(x), atol=1e-6, rtol=1e-6)

    # Exercise the multi-block (grid > 1) pipelined path.
    k2 = jax.random.PRNGKey(1)
    x2 = jax.random.normal(k2, (1, 8, 64, 64), dtype=jnp.float32)
    out2 = jax.block_until_ready(scaled_leaky_relu(x2))
    assert jnp.allclose(out2, _reference(x2), atol=1e-6, rtol=1e-6)

    # Exercise the non-128-divisible fallback (pure fused jnp, no extra passes).
    k3 = jax.random.PRNGKey(2)
    x3 = jax.random.normal(k3, (3, 5, 7), dtype=jnp.float32)
    out3 = jax.block_until_ready(scaled_leaky_relu(x3))
    assert jnp.allclose(out3, _reference(x3), atol=1e-6, rtol=1e-6)

    print("KERNEL_OK")
</pallas_src>

<mosaic_0001>
module attributes {stable_mosaic.version = 11 : i64} {
  func.func @_scaled_leaky_relu_kernel(%arg0: i32, %arg1: memref<2x1024xf32, #tpu.memory_space<vmem>>, %arg2: memref<2x1024xf32, #tpu.memory_space<vmem>>) attributes {dimension_semantics = [#tpu.dimension_semantics<parallel>], iteration_bounds = array<i64: 1>, scalar_prefetch = 0 : i64, scratch_operands = 0 : i64, tpu.core_type = #tpu.core_type<tc>, window_params = [{transform_indices = @transform_0, window_bounds = array<i64: 2, 1024>}, {transform_indices = @transform_1, window_bounds = array<i64: 2, 1024>}]} {
    %c0 = arith.constant 0 : index
    %c0_0 = arith.constant 0 : index
    %0 = vector.load %arg1[%c0, %c0_0] : memref<2x1024xf32, #tpu.memory_space<vmem>>, vector<2x1024xf32>
    %cst = arith.constant 0.000000e+00 : f32
    %1 = vector.broadcast %cst : f32 to vector<2x1024xf32>
    %2 = arith.cmpf oge, %0, %1 : vector<2x1024xf32>
    %cst_1 = arith.constant 1.41421354 : f32
    %cst_2 = arith.constant 0.282842726 : f32
    %3 = vector.broadcast %cst_1 : f32 to vector<2x1024xf32>
    %4 = vector.broadcast %cst_2 : f32 to vector<2x1024xf32>
    %5 = arith.select %2, %3, %4 : vector<2x1024xi1>, vector<2x1024xf32>
    %6 = arith.mulf %0, %5 : vector<2x1024xf32>
    %c0_3 = arith.constant 0 : index
    %c0_4 = arith.constant 0 : index
    %7 = vector.load %arg2[%c0_3, %c0_4] : memref<2x1024xf32, #tpu.memory_space<vmem>>, vector<2x1024xf32>
    tpu.vector_store %arg2[%c0_3, %c0_4], %6 {strides = array<i32>} : memref<2x1024xf32, #tpu.memory_space<vmem>>, vector<2x1024xf32>,
    return
  }
  func.func @transform_0(%arg0: i32) -> (i32, i32) {
    %c0_i32 = arith.constant 0 : i32
    %c0_i32_0 = arith.constant 0 : i32
    return %arg0, %c0_i32 : i32, i32
  }
  func.func @transform_1(%arg0: i32) -> (i32, i32) {
    %c0_i32 = arith.constant 0 : i32
    %c0_i32_0 = arith.constant 0 : i32
    return %arg0, %c0_i32 : i32, i32
  }
}

</mosaic_0001>

<bundles_post_ra>
// kernel: tpu_custom_call.1
= control target key start
LH: loop header
LB: loop body
LE: loop exit
PB: predicated region body
PF: predicated region fallthrough
CT: control target
= control target key end

     0   :  { %6 = vsyncpa [#allocation3], 0  ;;  %s112_s0 = inlined_call_operand.hbm [shape: f32[2,1024], index: 0, kind: input, shape index: {}]   ;;  %s113_s1 = inlined_call_operand.hbm [shape: f32[2,1024], index: 1, kind: output, shape index: {}]  }
   0x1   :  { %7 = vsyncpa [#allocation4], 0  ;;  %s93_s6 = smov [#allocation2]  }
   0x2   :  { %s14_s7 = sshll.u32 %s93_s6, 4  ;;  %s15_s7 = int_to_ptr.vmem [resolvable:$true] %s14_s7 }
   0x3   :  { %s57_s8 = scalar_lea.vmem %s15_s7, 256  ;;  %p62_p1 = scmp.lt.s32.totalorder %s15_s7, %s15_s7 }
   0x4   :  { %p58_p0 = scmp.ne.s32.totalorder %s15_s7, %s57_s8  ;;  %p63_p2 = scmp.lt.s32.totalorder %s57_s8, %s57_s8 }
   0x6   :  { %p64_p3 = por %p63_p2, %p62_p1 }
   0x8   :  { %p65_p4 = pnand %p64_p3, %p58_p0 }
   0xa   :  { %68 = shalt.err (!%p65_p4)
}
   0xb   :  { %17 = dma.hbm_to_vmem [thread:$0]  %s112_s0, 256, %s15_s7, [#allocation3]  }
   0xc   :  { %89 = dma.done.wait [#allocation3], 256  }
   0xd   :  { %90 = vsyncadd [#allocation3], 4294967040  ;;  %v21_v0 = vld [vmem:[#allocation2] sm:$0xff]  ;;  %v22_v1 = vld [vmem:[#allocation2 + $0x8] sm:$0xff]  ;;  %s94_s11 = smov [#allocation5]  }
   0xe   :  { %s37_s12 = sshll.u32 %s94_s11, 4  ;;  %vm23_vm0 = vcmp.ge.f32.partialorder %v21_v0, 0.0  ;;  %vm24_vm1 = vcmp.ge.f32.partialorder %v22_v1, 0.0  ;;  %v95_v2 = vmov 0.28284273   ;;  %s38_s12 = int_to_ptr.vmem [resolvable:$true] %s37_s12 }
   0xf   :  { %v25_v3 = vsel %vm23_vm0, 1.4142135, %v95_v2  ;;  %v26_v4 = vsel %vm24_vm1, 1.4142135, %v95_v2  ;;  %s69_s13 = scalar_lea.vmem %s38_s12, 256  ;;  %p74_p6 = scmp.lt.s32.totalorder %s38_s12, %s38_s12 }
  0x10   :  { %v27_v5 = vmul.f32 %v25_v3, %v21_v0  ;;  %v28_v6 = vmul.f32 %v26_v4, %v22_v1  ;;  %p70_p5 = scmp.ne.s32.totalorder %s38_s12, %s69_s13  ;;  %p75_p7 = scmp.lt.s32.totalorder %s69_s13, %s69_s13 }
  0x12   :  { %29 = vst [vmem:[#allocation5] sm:$0xff] %v27_v5  ;;  %30 = vst [vmem:[#allocation5 + $0x8] sm:$0xff] %v28_v6  ;;  %p76_p8 = por %p75_p7, %p74_p6 }
  0x14   :  { %p77_p9 = pnand %p76_p8, %p70_p5 }
  0x16   :  { %80 = shalt.err (!%p77_p9)
}
  0x17   :  { %40 = dma.vmem_to_hbm [thread:$0]  %s38_s12, 256, %s113_s1, [#allocation4]  }
  0x18   :  { %91 = dma.done.wait [#allocation4], 256  }
  0x19   :  { %92 = vsyncadd [#allocation4], 4294967040 }
  0x1a   :  { %44 = vsyncpa [#allocation3], 1 }
  0x1b   :  { %45 = vsyncpa [#allocation4], 1 }

</bundles_post_ra>
